<compile_context>
chip_gen: v6e
topology: v6e:2x2x1
jax: 0.10.0
libtpu: 0.0.40
codegen_flags: <defaults>
</compile_context>

<pallas_src>
import jax
import jax.numpy as jnp
from jax import lax
from jax.experimental import pallas as pl
from jax.experimental.pallas import tpu as pltpu


def channel_attention_kernel(wc_ref, ctx_ref, w_ref, out_wc_ref, out_attn_ref):
    """Single invocation; whole arrays resident in VMEM.

    wc_ref:       (B, idf, S2)  weightedContext
    ctx_ref:      (B, cdf, L)   context
    w_ref:        (S2, cdf)     squeezed 1x1-conv weight (shared across batch)
    out_wc_ref:   (B, idf, S2)  weightedContext_T (reshaped to (B, idf, ih, iw) in wrapper)
    out_attn_ref: (B, idf, L)   attention, natural layout (transposed to (B, L, idf) in wrapper)
    """
    batch = wc_ref.shape[0]
    w = w_ref[...]                                                          # (S2, cdf) f32

    # B is tiny (2): statically unrolled, back-to-back per-batch dots in one step.
    for b in range(batch):
        ctx_b = ctx_ref[b]                                                  # (cdf, L)
        wc_b = wc_ref[b]                                                    # (idf, S2)

        # 1x1 conv (no bias) over (cdf, L, 1) == W @ context.
        source_c = jnp.dot(w, ctx_b, preferred_element_type=jnp.float32)    # (S2, L)

        # attn = bmm(weightedContext, sourceC) -> (idf, L)
        scores = jnp.dot(wc_b, source_c, preferred_element_type=jnp.float32)  # (idf, L)

        # torch nn.Softmax() on the 2-D (B*idf, L) view == softmax over L; f32 math.
        scores = scores - jnp.max(scores, axis=-1, keepdims=True)
        e = jnp.exp(scores)
        attn = e / jnp.sum(e, axis=-1, keepdims=True)                       # (idf, L)

        # weightedContext_T = transpose(bmm(sourceC, attn^T)) == attn @ sourceC^T : (idf, S2)
        wct = lax.dot_general(
            attn, source_c,
            dimension_numbers=(((1,), (1,)), ((), ())),
            preferred_element_type=jnp.float32)                             # (idf, S2)

        out_wc_ref[b] = wct
        out_attn_ref[b] = attn


def channel_attention(weighted_context, context, conv_weight, ih, iw):
    """
    weighted_context: (B, idf, size*size) f32
    context:          (B, cdf, sourceL)   f32
    conv_weight:      (size*size, cdf)    f32   (1x1 conv weight, k=1 dims squeezed)
    returns: (weightedContext_T (B, idf, ih, iw), attn_c (B, sourceL, idf))
    """
    B, idf, S2 = weighted_context.shape
    _, cdf, L = context.shape
    assert S2 == ih * iw and conv_weight.shape == (S2, cdf)

    flops = 2 * B * (S2 * cdf * L + 2 * idf * S2 * L)
    bytes_accessed = 4 * (2 * B * idf * S2 + B * cdf * L + S2 * cdf + B * idf * L)

    out_wc, out_attn = pl.pallas_call(
        channel_attention_kernel,
        out_shape=(
            jax.ShapeDtypeStruct((B, idf, S2), jnp.float32),
            jax.ShapeDtypeStruct((B, idf, L), jnp.float32),
        ),
        in_specs=[
            pl.BlockSpec(memory_space=pltpu.MemorySpace.VMEM),
            pl.BlockSpec(memory_space=pltpu.MemorySpace.VMEM),
            pl.BlockSpec(memory_space=pltpu.MemorySpace.VMEM),
        ],
        out_specs=(
            pl.BlockSpec(memory_space=pltpu.MemorySpace.VMEM),
            pl.BlockSpec(memory_space=pltpu.MemorySpace.VMEM),
        ),
        cost_estimate=pl.CostEstimate(
            flops=flops,
            transcendentals=B * idf * L,
            bytes_accessed=bytes_accessed,
        ),
    )(weighted_context, context, conv_weight)

    # Final torch layouts: tiny, fusable relayouts done by XLA outside the kernel.
    weighted_context_t = out_wc.reshape(B, idf, ih, iw)
    attn_c = jnp.transpose(out_attn, (0, 2, 1))                             # (B, L, idf)
    return weighted_context_t, attn_c


def reference(weighted_context, context, conv_weight, ih, iw):
    """Pure-JAX (f32) reference replicating the torch forward."""
    B, idf, S2 = weighted_context.shape
    source_c = jnp.einsum("oc,bcl->bol", conv_weight, context)              # (B, S2, L)
    attn = jnp.einsum("bis,bsl->bil", weighted_context, source_c)           # (B, idf, L)
    attn = jax.nn.softmax(attn, axis=-1)
    attn_t = jnp.transpose(attn, (0, 2, 1))                                 # (B, L, idf)
    wct = jnp.einsum("bsl,bli->bsi", source_c, attn_t)                      # (B, S2, idf)
    wct = jnp.transpose(wct, (0, 2, 1)).reshape(B, idf, ih, iw)
    return wct, attn_t


if __name__ == "__main__":
    # module hyperparameters (small, consistent with the torch module)
    idf = 32          # image feature dim
    cdf = 4           # context (word) feature dim
    ih = iw = 4       # spatial size; size*size = 16
    size = ih
    B = 2             # batch
    L = 8             # sourceL (sequence length)

    key = jax.random.PRNGKey(0)
    k1, k2, k3 = jax.random.split(key, 3)
    weighted_context = jax.random.normal(k1, (B, idf, size * size), dtype=jnp.float32)
    context = jax.random.normal(k2, (B, cdf, L), dtype=jnp.float32)
    conv_weight = 0.1 * jax.random.normal(k3, (size * size, cdf), dtype=jnp.float32)

    wc_out, attn_out = channel_attention(weighted_context, context, conv_weight, ih, iw)
    jax.block_until_ready((wc_out, attn_out))

    wc_ref, attn_ref = reference(weighted_context, context, conv_weight, ih, iw)
    assert wc_out.shape == (B, idf, ih, iw)
    assert attn_out.shape == (B, L, idf)
    # All-f32 kernel math (no bf16 casts, exact softmax normalization); tolerance covers
    # MXU default-precision rounding differences vs. the XLA einsum reference.
    assert jnp.allclose(wc_out, wc_ref, atol=1e-2, rtol=1e-2)
    assert jnp.allclose(attn_out, attn_ref, atol=1e-2, rtol=1e-2)

    print("KERNEL_OK")
</pallas_src>

<mosaic_0001>
module attributes {stable_mosaic.version = 11 : i64} {
  func.func @channel_attention_kernel(%arg0: memref<2x32x16xf32, #tpu.memory_space<vmem>>, %arg1: memref<2x4x8xf32, #tpu.memory_space<vmem>>, %arg2: memref<16x4xf32, #tpu.memory_space<vmem>>, %arg3: memref<2x32x16xf32, #tpu.memory_space<vmem>>, %arg4: memref<2x32x8xf32, #tpu.memory_space<vmem>>) attributes {dimension_semantics = [], scalar_prefetch = 0 : i64, scratch_operands = 0 : i64, tpu.core_type = #tpu.core_type<tc>} {
    %c0 = arith.constant 0 : index
    %c0_0 = arith.constant 0 : index
    %0 = vector.load %arg2[%c0, %c0_0] : memref<16x4xf32, #tpu.memory_space<vmem>>, vector<16x4xf32>
    %c0_1 = arith.constant 0 : index
    %c0_2 = arith.constant 0 : index
    %c0_3 = arith.constant 0 : index
    %1 = vector.load %arg1[%c0_1, %c0_2, %c0_3] : memref<2x4x8xf32, #tpu.memory_space<vmem>>, vector<1x4x8xf32>
    %2 = vector.shape_cast %1 : vector<1x4x8xf32> to vector<4x8xf32>
    %c0_4 = arith.constant 0 : index
    %c0_5 = arith.constant 0 : index
    %c0_6 = arith.constant 0 : index
    %3 = vector.load %arg0[%c0_4, %c0_5, %c0_6] : memref<2x32x16xf32, #tpu.memory_space<vmem>>, vector<1x32x16xf32>
    %4 = vector.shape_cast %3 : vector<1x32x16xf32> to vector<32x16xf32>
    %cst = arith.constant dense<0.000000e+00> : vector<16x8xf32>
    %5 = tpu.matmul %0, %2, %cst {dimension_numbers = #tpu.dot_dimension_numbers<[1], [0], [0], [1], [0, 0, 1, 1], [], []>} : vector<16x4xf32>, vector<4x8xf32>, vector<16x8xf32> -> vector<16x8xf32>
    %cst_7 = arith.constant dense<0.000000e+00> : vector<32x8xf32>
    %6 = tpu.matmul %4, %5, %cst_7 {dimension_numbers = #tpu.dot_dimension_numbers<[1], [0], [0], [1], [0, 0, 1, 1], [], []>} : vector<32x16xf32>, vector<16x8xf32>, vector<32x8xf32> -> vector<32x8xf32>
    %cst_8 = arith.constant dense<0xFF800000> : vector<32xf32>
    %7 = vector.multi_reduction <maximumf>, %6, %cst_8 [1] : vector<32x8xf32> to vector<32xf32>
    %8 = vector.shape_cast %7 : vector<32xf32> to vector<32x1xf32>
    %9 = vector.broadcast %8 : vector<32x1xf32> to vector<32x8xf32>
    %10 = arith.subf %6, %9 : vector<32x8xf32>
    %11 = math.exp %10 : vector<32x8xf32>
    %cst_9 = arith.constant dense<0.000000e+00> : vector<32xf32>
    %12 = vector.multi_reduction <add>, %11, %cst_9 [1] : vector<32x8xf32> to vector<32xf32>
    %13 = vector.shape_cast %12 : vector<32xf32> to vector<32x1xf32>
    %14 = vector.broadcast %13 : vector<32x1xf32> to vector<32x8xf32>
    %15 = arith.divf %11, %14 : vector<32x8xf32>
    %cst_10 = arith.constant dense<0.000000e+00> : vector<32x16xf32>
    %16 = tpu.matmul %15, %5, %cst_10 {dimension_numbers = #tpu.dot_dimension_numbers<[1], [1], [0], [0], [0, 0, 1, 0], [], []>} : vector<32x8xf32>, vector<16x8xf32>, vector<32x16xf32> -> vector<32x16xf32>
    %c0_11 = arith.constant 0 : index
    %c0_12 = arith.constant 0 : index
    %c0_13 = arith.constant 0 : index
    %17 = vector.load %arg3[%c0_11, %c0_12, %c0_13] : memref<2x32x16xf32, #tpu.memory_space<vmem>>, vector<1x32x16xf32>
    %18 = vector.shape_cast %17 : vector<1x32x16xf32> to vector<32x16xf32>
    %19 = vector.shape_cast %16 : vector<32x16xf32> to vector<1x32x16xf32>
    tpu.vector_store %arg3[%c0_11, %c0_12, %c0_13], %19 {strides = array<i32>} : memref<2x32x16xf32, #tpu.memory_space<vmem>>, vector<1x32x16xf32>,
    %c0_14 = arith.constant 0 : index
    %c0_15 = arith.constant 0 : index
    %c0_16 = arith.constant 0 : index
    %20 = vector.load %arg4[%c0_14, %c0_15, %c0_16] : memref<2x32x8xf32, #tpu.memory_space<vmem>>, vector<1x32x8xf32>
    %21 = vector.shape_cast %20 : vector<1x32x8xf32> to vector<32x8xf32>
    %22 = vector.shape_cast %15 : vector<32x8xf32> to vector<1x32x8xf32>
    tpu.vector_store %arg4[%c0_14, %c0_15, %c0_16], %22 {strides = array<i32>} : memref<2x32x8xf32, #tpu.memory_space<vmem>>, vector<1x32x8xf32>,
    %c1 = arith.constant 1 : index
    %c0_17 = arith.constant 0 : index
    %c0_18 = arith.constant 0 : index
    %23 = vector.load %arg1[%c1, %c0_17, %c0_18] : memref<2x4x8xf32, #tpu.memory_space<vmem>>, vector<1x4x8xf32>
    %24 = vector.shape_cast %23 : vector<1x4x8xf32> to vector<4x8xf32>
    %c1_19 = arith.constant 1 : index
    %c0_20 = arith.constant 0 : index
    %c0_21 = arith.constant 0 : index
    %25 = vector.load %arg0[%c1_19, %c0_20, %c0_21] : memref<2x32x16xf32, #tpu.memory_space<vmem>>, vector<1x32x16xf32>
    %26 = vector.shape_cast %25 : vector<1x32x16xf32> to vector<32x16xf32>
    %cst_22 = arith.constant dense<0.000000e+00> : vector<16x8xf32>
    %27 = tpu.matmul %0, %24, %cst_22 {dimension_numbers = #tpu.dot_dimension_numbers<[1], [0], [0], [1], [0, 0, 1, 1], [], []>} : vector<16x4xf32>, vector<4x8xf32>, vector<16x8xf32> -> vector<16x8xf32>
    %cst_23 = arith.constant dense<0.000000e+00> : vector<32x8xf32>
    %28 = tpu.matmul %26, %27, %cst_23 {dimension_numbers = #tpu.dot_dimension_numbers<[1], [0], [0], [1], [0, 0, 1, 1], [], []>} : vector<32x16xf32>, vector<16x8xf32>, vector<32x8xf32> -> vector<32x8xf32>
    %cst_24 = arith.constant dense<0xFF800000> : vector<32xf32>
    %29 = vector.multi_reduction <maximumf>, %28, %cst_24 [1] : vector<32x8xf32> to vector<32xf32>
    %30 = vector.shape_cast %29 : vector<32xf32> to vector<32x1xf32>
    %31 = vector.broadcast %30 : vector<32x1xf32> to vector<32x8xf32>
    %32 = arith.subf %28, %31 : vector<32x8xf32>
    %33 = math.exp %32 : vector<32x8xf32>
    %cst_25 = arith.constant dense<0.000000e+00> : vector<32xf32>
    %34 = vector.multi_reduction <add>, %33, %cst_25 [1] : vector<32x8xf32> to vector<32xf32>
    %35 = vector.shape_cast %34 : vector<32xf32> to vector<32x1xf32>
    %36 = vector.broadcast %35 : vector<32x1xf32> to vector<32x8xf32>
    %37 = arith.divf %33, %36 : vector<32x8xf32>
    %cst_26 = arith.constant dense<0.000000e+00> : vector<32x16xf32>
    %38 = tpu.matmul %37, %27, %cst_26 {dimension_numbers = #tpu.dot_dimension_numbers<[1], [1], [0], [0], [0, 0, 1, 0], [], []>} : vector<32x8xf32>, vector<16x8xf32>, vector<32x16xf32> -> vector<32x16xf32>
    %c1_27 = arith.constant 1 : index
    %c0_28 = arith.constant 0 : index
    %c0_29 = arith.constant 0 : index
    %39 = vector.load %arg3[%c1_27, %c0_28, %c0_29] : memref<2x32x16xf32, #tpu.memory_space<vmem>>, vector<1x32x16xf32>
    %40 = vector.shape_cast %39 : vector<1x32x16xf32> to vector<32x16xf32>
    %41 = vector.shape_cast %38 : vector<32x16xf32> to vector<1x32x16xf32>
    tpu.vector_store %arg3[%c1_27, %c0_28, %c0_29], %41 {strides = array<i32>} : memref<2x32x16xf32, #tpu.memory_space<vmem>>, vector<1x32x16xf32>,
    %c1_30 = arith.constant 1 : index
    %c0_31 = arith.constant 0 : index
    %c0_32 = arith.constant 0 : index
    %42 = vector.load %arg4[%c1_30, %c0_31, %c0_32] : memref<2x32x8xf32, #tpu.memory_space<vmem>>, vector<1x32x8xf32>
    %43 = vector.shape_cast %42 : vector<1x32x8xf32> to vector<32x8xf32>
    %44 = vector.shape_cast %37 : vector<32x8xf32> to vector<1x32x8xf32>
    tpu.vector_store %arg4[%c1_30, %c0_31, %c0_32], %44 {strides = array<i32>} : memref<2x32x8xf32, #tpu.memory_space<vmem>>, vector<1x32x8xf32>,
    return
  }
}

</mosaic_0001>

<bundles_post_ra>
// kernel: tpu_custom_call.1
= control target key start
LH: loop header
LB: loop body
LE: loop exit
PB: predicated region body
PF: predicated region fallthrough
CT: control target
= control target key end

     0   :  { %vm30_vm0 = vcmask 1043456   ;;  %vm23_vm1 = vcmask 31744   ;;  %vm109_vm2 = vcmask 130048   ;;  %vm207_vm3 = vcmask 64512   ;;  %s1046_s1 = inlined_call_operand.vmem [shape: f32[2,4,8], index: 1, kind: input, shape index: {}]   ;;  %s1047_s2 = inlined_call_operand.vmem [shape: f32[16,4], index: 2, kind: input, shape index: {}]   ;;  %s1048_s0 = inlined_call_operand.vmem [shape: f32[2,32,16], index: 0, kind: input, shape index: {}]   ;;  %s1049_s4 = inlined_call_operand.vmem [shape: f32[2,32,8], index: 4, kind: output, shape index: {1}]   ;;  %s1050_s3 = inlined_call_operand.vmem [shape: f32[2,32,16], index: 3, kind: output, shape index: {0}]  }
   0x1   :  { %v18_v0 = vld [vmem:[%s1046_s1] sm:$0xf]  ;;  %v17_v2 = vld [vmem:[%s1047_s2 + $0x8] sm:$0xff]  ;;  %v723_v5 = vld [vmem:[%s1046_s1 + $0x4] sm:$0xf] }
   0x2   :  { %v16_v1 = vld [vmem:[%s1047_s2] sm:$0xff]  ;;  %779 = vmatprep.subr.msk.mxu0 %vm30_vm0, %v18_v0  ;;  %v20_v7 = vld [vmem:[%s1048_s0 + $0x8] sm:$0xff]  ;;  %v21_v8 = vld [vmem:[%s1048_s0 + $0x10] sm:$0xff] }
   0x3   :  { %781 = vmatprep.mubr.msk.f32.mxu0 %vm23_vm1, %v16_v1  ;;  %780 = vmatpush3.msk.msra.mxu0 %vm30_vm0, %v18_v0  ;;  %v19_v3 = vld [vmem:[%s1048_s0] sm:$0xff]  ;;  %v22_v9 = vld [vmem:[%s1048_s0 + $0x18] sm:$0xff]  ;;  %v725_v20 = vld [vmem:[%s1048_s0 + $0x28] sm:$0xff] }
   0x4   :  { %782 = vmatmul.mubr.msk.f32.vlgmr.msra.gmra.mxu0 %vm23_vm1, %v17_v2  ;;  %788 = vmatprep.mubr.msk.f32.mxu1 %vm109_vm2, %v19_v3  ;;  %v724_v10 = vld [vmem:[%s1048_s0 + $0x20] sm:$0xff]  ;;  %v726_v22 = vld [vmem:[%s1048_s0 + $0x30] sm:$0xff]  ;;  %v727_v23 = vld [vmem:[%s1048_s0 + $0x38] sm:$0xff] }
  0xc4   :  { %v783_v4 = vpop.f32.mrf.mxu0 }
  0xc5   :  { %784 = vmatprep.subr.mxu1 %v783_v4  ;;  %794 = vmatprep.subr.msk.mxu0 %vm207_vm3, %v783_v4 }
  0xc6   :  { %v100_v6 = vpop.f32.mrf.mxu0  ;;  %785 = vmatpush3.msra.mxu1 %v783_v4  ;;  %795 = vmatpush3.xpose.msk.msra.mxu0 %vm207_vm3, %v783_v4 }
  0xc7   :  { %786 = vmatprep.subr.mxu1 %v100_v6  ;;  %796 = vmatprep.subr.msk.mxu0 %vm207_vm3, %v100_v6 }
  0xc8   :  { %787 = vmatpush3.msra.mxu1 %v100_v6 }
  0xc9   :  { %789 = vmatmul.mubr.msk.f32.vlgmr.msra.gmra.mxu1 %vm109_vm2, %v20_v7  ;;  %804 = vmatprep.subr.msk.mxu1 %vm30_vm0, %v723_v5 }
  0xca   :  { %797 = vmatpush3.xpose.msk.msra.mxu0 %vm207_vm3, %v100_v6  ;;  %805 = vmatpush3.msk.msra.mxu1 %vm30_vm0, %v723_v5 }
  0xcb   :  { %791 = vmatprep.mubr.msk.f32.mxu1 %vm109_vm2, %v21_v8 }
  0xcd   :  { %792 = vmatmul.mubr.msk.f32.gmra.mxu1 %vm109_vm2, %v22_v9 }
  0xce   :  { %806 = vmatprep.mubr.msk.f32.mxu1 %vm23_vm1, %v16_v1 }
  0xd1   :  { %807 = vmatmul.mubr.msk.f32.vlgmr.msra.gmra.mxu1 %vm23_vm1, %v17_v2 }
  0xd2   :  { %813 = vmatprep.mubr.msk.f32.mxu1 %vm109_vm2, %v724_v10 }
 0x189   :  { %v790_v11 = vpop.f32.mrf.mxu1 }
 0x18a   :  { %v211_v16 = vsel %vm207_vm3, %v790_v11, -inf }
 0x18b   :  { %v188_v12 = vpop.f32.mrf.mxu1 }
 0x18c   :  { %v208_v13 = vsel %vm207_vm3, %v188_v12, -inf }
 0x18d   :  { %209 = vmax.xlane.f32.xlu0 %v208_v13  ;;  %v793_v14 = vpop.f32.mrf.mxu1 }
 0x18e   :  { %v217_v21 = vsel %vm207_vm3, %v793_v14, -inf }
 0x18f   :  { %v198_v15 = vpop.f32.mrf.mxu1 }
 0x190   :  { %v214_v17 = vsel %vm207_vm3, %v198_v15, -inf }
 0x191   :  { %212 = vmax.xlane.f32.xlu0 %v211_v16  ;;  %v933_v18 = vpop.f32.mrf.mxu1  ;;  %215 = vmax.xlane.f32.xlu1 %v214_v17 }
 0x192   :  { %809 = vmatprep.subr.mxu1 %v933_v18  ;;  %819 = vmatprep.subr.msk.mxu0 %vm207_vm3, %v933_v18 }
 0x193   :  { %v938_v19 = vpop.f32.mrf.mxu1  ;;  %810 = vmatpush3.msra.mxu1 %v933_v18 }
 0x194   :  { %811 = vmatprep.subr.mxu1 %v938_v19 }
 0x195   :  { %812 = vmatpush3.msra.mxu1 %v938_v19  ;;  %218 = vmax.xlane.f32.xlu1 %v217_v21 }
 0x196   :  { %814 = vmatmul.mubr.msk.f32.vlgmr.msra.gmra.mxu1 %vm109_vm2, %v725_v20 }
 0x197   :  { %816 = vmatprep.mubr.msk.f32.mxu1 %vm109_vm2, %v726_v22 }
 0x19a   :  { %817 = vmatmul.mubr.msk.f32.gmra.mxu1 %vm109_vm2, %v727_v23 }
 0x216   :  { %v210_v24 = vpop.xlane.xlu0 %209 }
 0x217   :  { %v220_v29 = vsub.f32 %v188_v12, %v210_v24 }
 0x219   :  { %v224_v32 = vmul.f32 1.442695, %v220_v29 }
 0x21a   :  { %v216_v25 = vpop.xlane.xlu1 %215  ;;  %v213_v26 = vpop.xlane.xlu0 %212 }
 0x21b   :  { %v221_v27 = vsub.f32 %v790_v11, %v213_v26  ;;  %v222_v33 = vsub.f32 %v198_v15, %v216_v25 }
 0x21d   :  { %v226_v30 = vmul.f32 1.442695, %v221_v27  ;;  %v228_v35 = vmul.f32 1.442695, %v222_v33 }
 0x21e   :  { %v219_v28 = vpop.xlane.xlu1 %218 }
 0x21f   :  { %v223_v31 = vsub.f32 %v793_v14, %v219_v28  ;;  %829 = vpow2.f32 %v226_v30 }
 0x220   :  { %831 = vpow2.f32 %v224_v32 }
 0x221   :  { %v230_v34 = vmul.f32 1.442695, %v223_v31 }
 0x223   :  { %833 = vpow2.f32 %v230_v34 }
 0x224   :  { %835 = vpow2.f32 %v228_v35 }
 0x22c   :  { %v830_v42 = vpop.eup %829 }
 0x22d   :  { %v832_v45 = vpop.eup %831  ;;  %v235_v46 = vsel %vm207_vm3, %v830_v42, 0.0 }
 0x22e   :  { %v232_v48 = vsel %vm207_vm3, %v832_v45, 0.0 }
 0x230   :  { %v834_v47 = vpop.eup %833 }
 0x231   :  { %v836_v49 = vpop.eup %835  ;;  %v241_v50 = vsel %vm207_vm3, %v834_v47, 0.0 }
 0x232   :  { %v238_v51 = vsel %vm207_vm3, %v836_v49, 0.0 }
 0x256   :  { %v815_v36 = vpop.f32.mrf.mxu1 }
 0x257   :  { %v548_v37 = vsel %vm207_vm3, %v815_v36, -inf }
 0x258   :  { %v526_v38 = vpop.f32.mrf.mxu1  ;;  %549 = vmax.xlane.f32.xlu1 %v548_v37 }
 0x259   :  { %v545_v39 = vsel %vm207_vm3, %v526_v38, -inf }
 0x25a   :  { %546 = vmax.xlane.f32.xlu0 %v545_v39  ;;  %v818_v40 = vpop.f32.mrf.mxu1 }
 0x25b   :  { %v554_v41 = vsel %vm207_vm3, %v818_v40, -inf }
 0x25c   :  { %v536_v43 = vpop.f32.mrf.mxu1  ;;  %555 = vmax.xlane.f32.xlu1 %v554_v41 }
 0x25d   :  { %v551_v44 = vsel %vm207_vm3, %v536_v43, -inf }
 0x25e   :  { %552 = vmax.xlane.f32.xlu0 %v551_v44 }
 0x260   :  { %236 = vadd.xlane.f32.xlu1 %v235_v46 }
 0x262   :  { %233 = vadd.xlane.f32.xlu0 %v232_v48 }
 0x264   :  { %242 = vadd.xlane.f32.xlu1 %v241_v50 }
 0x266   :  { %239 = vadd.xlane.f32.xlu0 %v238_v51 }
 0x2e1   :  { %v550_v52 = vpop.xlane.xlu1 %549 }
 0x2e2   :  { %v558_v53 = vsub.f32 %v815_v36, %v550_v52 }
 0x2e3   :  { %v547_v54 = vpop.xlane.xlu0 %546 }
 0x2e4   :  { %v563_v55 = vmul.f32 1.442695, %v558_v53  ;;  %v557_v56 = vsub.f32 %v526_v38, %v547_v54 }
 0x2e5   :  { %v556_v57 = vpop.xlane.xlu1 %555 }
 0x2e6   :  { %837 = vpow2.f32 %v563_v55  ;;  %v561_v58 = vmul.f32 1.442695, %v557_v56  ;;  %v560_v59 = vsub.f32 %v818_v40, %v556_v57 }
 0x2e7   :  { %v553_v60 = vpop.xlane.xlu0 %552 }
 0x2e8   :  { %839 = vpow2.f32 %v561_v58  ;;  %v567_v61 = vmul.f32 1.442695, %v560_v59  ;;  %v559_v62 = vsub.f32 %v536_v43, %v553_v60 }
 0x2e9   :  { %v237_v63 = vpop.xlane.xlu1 %236 }
 0x2ea   :  { %841 = vpow2.f32 %v567_v61  ;;  %v565_v0 = vmul.f32 1.442695, %v559_v62 }
 0x2eb   :  { %843 = vrcp.f32 %v237_v63  ;;  %v234_v1 = vpop.xlane.xlu0 %233 }
 0x2ec   :  { %845 = vpow2.f32 %v565_v0 }
 0x2ed   :  { %847 = vrcp.f32 %v234_v1  ;;  %v243_v2 = vpop.xlane.xlu1 %242 }
 0x2ee   :  { %849 = vrcp.f32 %v243_v2 }
 0x2ef   :  { %v240_v3 = vpop.xlane.xlu0 %239 }
 0x2f0   :  { %851 = vrcp.f32 %v240_v3 }
 0x2f3   :  { %v838_v4 = vpop.eup %837 }
 0x2f4   :  { %v572_v5 = vsel %vm207_vm3, %v838_v4, 0.0 }
 0x2f5   :  { %v840_v6 = vpop.eup %839  ;;  %573 = vadd.xlane.f32.xlu1 %v572_v5 }
 0x2f6   :  { %v569_v7 = vsel %vm207_vm3, %v840_v6, 0.0 }
 0x2f7   :  { %v842_v8 = vpop.eup %841  ;;  %570 = vadd.xlane.f32.xlu0 %v569_v7 }
 0x2f8   :  { %v844_v9 = vpop.eup %843  ;;  %v578_v10 = vsel %vm207_vm3, %v842_v8, 0.0 }
 0x2f9   :  { %v846_v11 = vpop.eup %845  ;;  %579 = vadd.xlane.f32.xlu1 %v578_v10  ;;  %v247_v12 = vmul.f32 %v844_v9, %v830_v42 }
 0x2fa   :  { %v848_v13 = vpop.eup %847  ;;  %v575_v14 = vsel %vm207_vm3, %v846_v11, 0.0 }
 0x2fb   :  { %v850_v15 = vpop.eup %849  ;;  %576 = vadd.xlane.f32.xlu0 %v575_v14  ;;  %v245_v16 = vmul.f32 %v848_v13, %v832_v45  ;;  %360 = vst.msk [vmem:[%s1049_s4 + $0x8] sm:$0xff] %vm207_vm3, %v247_v12 }
 0x2fc   :  { %v251_v17 = vmul.f32 %v850_v15, %v834_v47 }
 0x2fd   :  { %v852_v20 = vpop.eup %851  ;;  %798 = vmatprep.mubr.msk.f32.mxu0 %vm207_vm3, %v245_v16  ;;  %359 = vst.msk [vmem:[%s1049_s4] sm:$0xff] %vm207_vm3, %v245_v16 }
 0x2fe   :  { %799 = vmatmul.mubr.msk.f32.vlgmr.msra.gmra.mxu0 %vm207_vm3, %v247_v12  ;;  %v249_v21 = vmul.f32 %v852_v20, %v836_v49  ;;  %362 = vst.msk [vmem:[%s1049_s4 + $0x18] sm:$0xff] %vm207_vm3, %v251_v17 }
 0x2ff   :  { %820 = vmatpush3.xpose.msk.msra.mxu0 %vm207_vm3, %v933_v18 }
 0x300   :  { %821 = vmatprep.subr.msk.mxu0 %vm207_vm3, %v938_v19  ;;  %801 = vmatprep.mubr.msk.f32.mxu0 %vm207_vm3, %v249_v21  ;;  %361 = vst.msk [vmem:[%s1049_s4 + $0x10] sm:$0xff] %vm207_vm3, %v249_v21 }
 0x302   :  { %802 = vmatmul.mubr.msk.f32.gmra.mxu0 %vm207_vm3, %v251_v17 }
 0x303   :  { %822 = vmatpush3.xpose.msk.msra.mxu0 %vm207_vm3, %v938_v19 }
 0x37e   :  { %v574_v22 = vpop.xlane.xlu1 %573 }
 0x37f   :  { %853 = vrcp.f32 %v574_v22 }
 0x380   :  { %v571_v23 = vpop.xlane.xlu0 %570 }
 0x381   :  { %855 = vrcp.f32 %v571_v23 }
 0x382   :  { %v580_v18 = vpop.xlane.xlu1 %579 }
 0x383   :  { %857 = vrcp.f32 %v580_v18 }
 0x384   :  { %v577_v24 = vpop.xlane.xlu0 %576 }
 0x385   :  { %859 = vrcp.f32 %v577_v24 }
 0x38c   :  { %v854_v25 = vpop.eup %853 }
 0x38d   :  { %v584_v26 = vmul.f32 %v854_v25, %v838_v4 }
 0x38e   :  { %v856_v27 = vpop.eup %855 }
 0x38f   :  { %746 = vst.msk [vmem:[%s1049_s4 + $0x28] sm:$0xff] %vm207_vm3, %v584_v26  ;;  %v582_v28 = vmul.f32 %v856_v27, %v840_v6 }
 0x390   :  { %v858_v29 = vpop.eup %857 }
 0x391   :  { %823 = vmatprep.mubr.msk.f32.mxu0 %vm207_vm3, %v582_v28  ;;  %745 = vst.msk [vmem:[%s1049_s4 + $0x20] sm:$0xff] %vm207_vm3, %v582_v28  ;;  %v588_v19 = vmul.f32 %v858_v29, %v842_v8 }
 0x392   :  { %v860_v30 = vpop.eup %859  ;;  %824 = vmatmul.mubr.msk.f32.vlgmr.msra.gmra.mxu0 %vm207_vm3, %v584_v26 }
 0x393   :  { %v586_v31 = vmul.f32 %v860_v30, %v846_v11  ;;  %748 = vst.msk [vmem:[%s1049_s4 + $0x38] sm:$0xff] %vm207_vm3, %v588_v19 }
 0x395   :  { %826 = vmatprep.mubr.msk.f32.mxu0 %vm207_vm3, %v586_v31  ;;  %747 = vst.msk [vmem:[%s1049_s4 + $0x30] sm:$0xff] %vm207_vm3, %v586_v31 }
 0x396   :  { %827 = vmatmul.mubr.msk.f32.gmra.mxu0 %vm207_vm3, %v588_v19 }
 0x3be   :  { %v800_v32 = vpop.f32.mrf.mxu0 }
 0x3bf   :  { %356 = vst.msk [vmem:[%s1050_s3 + $0x8] sm:$0xff] %vm109_vm2, %v800_v32 }
 0x3c0   :  { %v336_v33 = vpop.f32.mrf.mxu0 }
 0x3c1   :  { %355 = vst.msk [vmem:[%s1050_s3] sm:$0xff] %vm109_vm2, %v336_v33 }
 0x3c2   :  { %v803_v34 = vpop.f32.mrf.mxu0 }
 0x3c3   :  { %358 = vst.msk [vmem:[%s1050_s3 + $0x18] sm:$0xff] %vm109_vm2, %v803_v34 }
 0x3c4   :  { %v346_v35 = vpop.f32.mrf.mxu0 }
 0x3c5   :  { %357 = vst.msk [vmem:[%s1050_s3 + $0x10] sm:$0xff] %vm109_vm2, %v346_v35 }
 0x452   :  { %v825_v36 = vpop.f32.mrf.mxu0 }
 0x453   :  { %742 = vst.msk [vmem:[%s1050_s3 + $0x28] sm:$0xff] %vm109_vm2, %v825_v36 }
 0x454   :  { %v673_v37 = vpop.f32.mrf.mxu0 }
 0x455   :  { %741 = vst.msk [vmem:[%s1050_s3 + $0x20] sm:$0xff] %vm109_vm2, %v673_v37 }
 0x456   :  { %v828_v38 = vpop.f32.mrf.mxu0 }
 0x457   :  { %744 = vst.msk [vmem:[%s1050_s3 + $0x38] sm:$0xff] %vm109_vm2, %v828_v38 }
 0x458   :  { %v683_v39 = vpop.f32.mrf.mxu0 }
 0x459   :  { %743 = vst.msk [vmem:[%s1050_s3 + $0x30] sm:$0xff] %vm109_vm2, %v683_v39 }

</bundles_post_ra>
